<compile_context>
chip_gen: v7x
topology: tpu7x:2x2x1
jax: 0.10.0
libtpu: 0.0.40
codegen_flags: <defaults>
</compile_context>

<pallas_src>
import functools

import numpy as np
import jax
import jax.numpy as jnp
from jax import lax
from jax.experimental import pallas as pl
from jax.experimental.pallas import tpu as pltpu


# ---------------- config (InvertedResidualConfig, width_mult=1.0) ----------------
def _make_divisible(v, divisor=8, min_value=None):
    if min_value is None:
        min_value = divisor
    new_v = max(min_value, int(v + divisor / 2) // divisor * divisor)
    if new_v < 0.9 * v:
        new_v += divisor
    return new_v


CIN = _make_divisible(8 * 1.0, 8)       # 8   input_channels
CEXP = _make_divisible(16 * 1.0, 8)     # 16  expanded_channels
COUT = _make_divisible(8 * 1.0, 8)      # 8   out_channels
CSQ = _make_divisible(CEXP // 4, 8)     # 8   SE squeeze channels
K = 3                                   # depthwise kernel size
STRIDE = 1
DILATION = 1
PAD = (K - 1) // 2 * DILATION
USE_RES = (STRIDE == 1 and CIN == COUT)  # True
BN_EPS = 1e-5

LANE = 128                               # TPU lane width

# ---- packed parameter buffer layout (all row offsets are multiples of 8) ----
# Weights: output channel on sublanes.  Biases: (C, 1) columns (channel on sublanes).
_W1 = 0                      # (CEXP, CIN)
_B1 = _W1 + CEXP             # (CEXP, 1)   column
_WDW = _B1 + CEXP            # (CEXP, K)   expand-hardswish 1/6 folded in
_BDW = _WDW + CEXP           # (CEXP, 1)   column
_SE1T = _BDW + CEXP          # (CEXP, CSQ) = sew1.T, dw-hardswish 1/6 folded in
_SEB1 = _SE1T + CEXP         # (1, CSQ)    row (8 rows reserved for alignment)
_SE2 = _SEB1 + 8             # (CEXP, CSQ)
_SEB2 = _SE2 + CEXP          # (CEXP, 1)   column
_W3 = _SEB2 + CEXP           # (COUT, CEXP) dw-hardswish 1/6 folded in
_B3 = _W3 + COUT             # (COUT, 1)   column
_PROWS = _B3 + COUT          # 136
_PCOLS = CEXP                # 16


# ---------------- activations (full versions, used by the reference) ----------------
def _hardswish(x):
    return x * jnp.clip(x + 3.0, 0.0, 6.0) * (1.0 / 6.0)


def _hardsigmoid(x):
    return jnp.clip(x + 3.0, 0.0, 6.0) * (1.0 / 6.0)


# ---------------- Pallas kernel ----------------
def inverted_residual_kernel(x_prev_ref, x_cur_ref, x_next_ref, p_ref, o_ref,
                             acc_ref, scale_ref, *, l_valid):
    phase = pl.program_id(1)            # 0: SE-statistics pass, 1: compute/write pass
    lidx = pl.program_id(2)             # L-tile index
    lt = x_cur_ref.shape[-1]            # lanes per L tile (static)

    # --- packed, BN-folded parameters (channel on sublanes everywhere) ---
    w1 = p_ref[_W1:_W1 + CEXP, :CIN]            # (CEXP, CIN)
    b1 = p_ref[_B1:_B1 + CEXP, 0:1]             # (CEXP, 1)
    wdw = p_ref[_WDW:_WDW + CEXP, :K]           # (CEXP, 3)
    bdw = p_ref[_BDW:_BDW + CEXP, 0:1]          # (CEXP, 1)
    se1t = p_ref[_SE1T:_SE1T + CEXP, :CSQ]      # (CEXP, CSQ)
    seb1 = p_ref[_SEB1:_SEB1 + 1, :CSQ]         # (1, CSQ)
    se2 = p_ref[_SE2:_SE2 + CEXP, :CSQ]         # (CEXP, CSQ)
    seb2 = p_ref[_SEB2:_SEB2 + CEXP, 0:1]       # (CEXP, 1)
    w3 = p_ref[_W3:_W3 + COUT, :CEXP]           # (COUT, CEXP)
    b3 = p_ref[_B3:_B3 + COUT, 0:1]             # (COUT, 1)

    x = x_cur_ref[...].astype(jnp.float32)      # (CIN, lt), L on lanes

    # one tiny iota reused for all edge / validity masks (review item)
    lane = lax.broadcasted_iota(jnp.int32, (1, lt), 1)     # (1, lt)
    gpos = lane + lidx * lt                                # global L position

    # shifted copies of x with the cross-tile halo column patched in at the edge
    xl = pltpu.roll(x, 1, axis=1)                                        # x[l-1]
    xl = jnp.where(lane == 0, x_prev_ref[:, lt - 1:lt], xl)
    xr = pltpu.roll(x, lt - 1, axis=1)                                   # x[l+1]
    xr = jnp.where(lane == lt - 1, x_next_ref[:, 0:1], xr)

    # 1x1 expand conv + folded BN + Hardswish  (its 1/6 is folded into wdw).
    # MXU matmul (CEXP, CIN) @ (CIN, lt); also applied to the shifted copies so the
    # depthwise taps come out lane-aligned (the expansion is pointwise/affine).
    def expand(v):
        z = jnp.dot(w1, v, preferred_element_type=jnp.float32) + b1
        return z * jnp.clip(z + 3.0, 0.0, 6.0)          # == 6 * hardswish(z)

    h = expand(x)                                           # (CEXP, lt)
    hl = jnp.where(gpos == 0, 0.0, expand(xl))              # zero conv pad (left)
    hr = jnp.where(gpos == l_valid - 1, 0.0, expand(xr))    # zero conv pad (right)

    # depthwise conv k=3 + folded BN + Hardswish (its 1/6 folded into se1t & w3)
    dz = hl * wdw[:, 0:1] + h * wdw[:, 1:2] + hr * wdw[:, 2:3] + bdw
    dw = dz * jnp.clip(dz + 3.0, 0.0, 6.0)                  # (CEXP, lt)

    # -------- phase 0: accumulate SE statistics over the valid length --------
    @pl.when(phase == 0)
    def _():
        @pl.when(lidx == 0)
        def _():
            acc_ref[...] = jnp.zeros_like(acc_ref)
        acc_ref[...] += jnp.sum(jnp.where(gpos < l_valid, dw, 0.0),
                                axis=1, keepdims=True)      # (CEXP, 1)

    # -------- phase 1: SE scale, 1x1 project (MXU), residual, write --------
    @pl.when(phase == 1)
    def _():
        @pl.when(lidx == 0)
        def _():
            s = acc_ref[...] * (1.0 / l_valid)                               # (CEXP, 1)
            t = jnp.maximum(jnp.sum(se1t * s, axis=0, keepdims=True) + seb1, 0.0)
            sc = jnp.sum(se2 * t, axis=1, keepdims=True) + seb2             # (CEXP, 1)
            scale_ref[...] = jnp.clip(sc + 3.0, 0.0, 6.0) * (1.0 / 6.0)     # hardsigmoid

        dws = dw * scale_ref[...]                                            # (CEXP, lt)
        out = jnp.dot(w3, dws, preferred_element_type=jnp.float32) + b3     # (COUT, lt)
        if USE_RES:
            out = out + x
        o_ref[...] = out.astype(o_ref.dtype)


# ---------------- wrapper ----------------
def inverted_residual(x_ncl, packed_params, *, l_tile=2048):
    """x_ncl: (N, CIN, L) float32, PyTorch-native channels-first layout."""
    N, C, L = x_ncl.shape
    assert C == CIN
    assert l_tile % LANE == 0 and l_tile >= LANE

    lp = -(-L // LANE) * LANE           # pad L up to a lane multiple
    lt = min(l_tile, lp)                # L tile size (multiple of 128)
    nlt = -(-lp // lt)                  # number of L tiles
    lp2 = nlt * lt                      # padded length actually used
    x_in = x_ncl if lp2 == L else jnp.pad(x_ncl, ((0, 0), (0, 0), (0, lp2 - L)))

    grid = (N, 2, nlt)                  # (batch | phase: stats, apply | L tiles)
    kernel = functools.partial(inverted_residual_kernel, l_valid=L)

    out = pl.pallas_call(
        kernel,
        out_shape=jax.ShapeDtypeStruct((N, COUT, lp2), x_ncl.dtype),
        grid=grid,
        in_specs=[
            # previous / current / next L tile of x (halo columns for the k=3 conv)
            pl.BlockSpec((None, CIN, lt),
                         lambda b, p, l: (b, 0, jnp.maximum(l - 1, 0))),
            pl.BlockSpec((None, CIN, lt), lambda b, p, l: (b, 0, l)),
            pl.BlockSpec((None, CIN, lt),
                         lambda b, p, l: (b, 0, jnp.minimum(l + 1, nlt - 1))),
            # all folded parameters in one packed buffer -> one small DMA
            pl.BlockSpec((_PROWS, _PCOLS), lambda b, p, l: (0, 0)),
        ],
        # phase 0 writes nothing: keep the out block index pinned (l*p == 0) so no
        # garbage tiles are flushed; phase 1 writes every tile exactly once.
        out_specs=pl.BlockSpec((None, COUT, lt), lambda b, p, l: (b, 0, l * p)),
        scratch_shapes=[pltpu.VMEM((CEXP, 1), jnp.float32),   # SE sum accumulator
                        pltpu.VMEM((CEXP, 1), jnp.float32)],  # SE scale
        compiler_params=pltpu.CompilerParams(
            dimension_semantics=("parallel", "arbitrary", "arbitrary"),
            vmem_limit_bytes=32 * 1024 * 1024),
    )(x_in, x_in, x_in, packed_params)
    return out if lp2 == L else out[:, :, :L]


# ---------------- deterministic parameter init + BN folding ----------------
def init_params(key):
    ks = jax.random.split(key, 16)

    def conv_w(k, shape, fan_in):
        bound = 1.0 / np.sqrt(fan_in)
        return jax.random.uniform(k, shape, jnp.float32, -bound, bound)

    # raw conv weights in PyTorch layout (O, I, K)
    w1_raw = conv_w(ks[0], (CEXP, CIN, 1), CIN)        # expand 1x1
    wdw_raw = conv_w(ks[1], (CEXP, 1, K), K)           # depthwise
    w3_raw = conv_w(ks[2], (COUT, CEXP, 1), CEXP)      # project 1x1

    def bn_params(kg, kb, km, kv, c):
        gamma = jax.random.uniform(kg, (c,), jnp.float32, 0.5, 1.5)
        beta = jax.random.uniform(kb, (c,), jnp.float32, -0.5, 0.5)
        mean = jax.random.uniform(km, (c,), jnp.float32, -0.5, 0.5)
        var = jax.random.uniform(kv, (c,), jnp.float32, 0.5, 1.5)
        return gamma, beta, mean, var

    bn1 = bn_params(ks[3], ks[4], ks[5], ks[6], CEXP)
    bn2 = bn_params(ks[7], ks[8], ks[9], ks[10], CEXP)
    bn3 = bn_params(ks[11], ks[12], ks[13], ks[14], COUT)

    def fold(w_oik, bn):
        gamma, beta, mean, var = bn
        scale = gamma / jnp.sqrt(var + BN_EPS)
        return w_oik * scale[:, None, None], beta - mean * scale

    w1f, b1 = fold(w1_raw, bn1)
    wdwf, bdw = fold(wdw_raw, bn2)
    w3f, b3 = fold(w3_raw, bn3)

    # SE 1x1 convs (with bias)
    kk = jax.random.split(ks[15], 4)
    sew1 = conv_w(kk[0], (CSQ, CEXP, 1), CEXP)[:, :, 0]   # (CSQ, CEXP)
    seb1 = conv_w(kk[1], (CSQ,), CEXP)
    sew2 = conv_w(kk[2], (CEXP, CSQ, 1), CSQ)[:, :, 0]    # (CEXP, CSQ)
    seb2 = conv_w(kk[3], (CEXP,), CSQ)

    w1 = w1f[:, :, 0]       # (CEXP, CIN)
    wdw = wdwf[:, 0, :]     # (CEXP, K)
    w3 = w3f[:, :, 0]       # (COUT, CEXP)

    return (w1, b1, wdw, bdw, sew1, seb1, sew2, seb2, w3, b3)


def pack_params(params):
    """Pack the 10 parameter arrays into one (_PROWS, _PCOLS) f32 buffer.

    Biases are stored as (C, 1) columns; the 1/6 factors of both hardswish
    activations are folded into wdw (expand-hs) and into sew1 & w3 (depthwise-hs).
    """
    w1, b1, wdw, bdw, sew1, seb1, sew2, seb2, w3, b3 = params
    sixth = 1.0 / 6.0
    P = jnp.zeros((_PROWS, _PCOLS), jnp.float32)
    P = P.at[_W1:_W1 + CEXP, :CIN].set(w1)
    P = P.at[_B1:_B1 + CEXP, 0].set(b1)
    P = P.at[_WDW:_WDW + CEXP, :K].set(wdw * sixth)          # fold expand-hardswish 1/6
    P = P.at[_BDW:_BDW + CEXP, 0].set(bdw)
    P = P.at[_SE1T:_SE1T + CEXP, :CSQ].set(sew1.T * sixth)   # fold dw-hardswish 1/6
    P = P.at[_SEB1, :CSQ].set(seb1)
    P = P.at[_SE2:_SE2 + CEXP, :CSQ].set(sew2)
    P = P.at[_SEB2:_SEB2 + CEXP, 0].set(seb2)
    P = P.at[_W3:_W3 + COUT, :CEXP].set(w3 * sixth)          # fold dw-hardswish 1/6
    P = P.at[_B3:_B3 + COUT, 0].set(b3)
    return P


# ---------------- pure-JAX reference (for correctness check) ----------------
def reference(x_ncl, params):
    w1, b1, wdw, bdw, sew1, seb1, sew2, seb2, w3, b3 = params
    hi = lax.Precision.HIGHEST
    L = x_ncl.shape[2]
    h = _hardswish(jnp.einsum('ec,ncl->nel', w1, x_ncl, precision=hi)
                   + b1[None, :, None])
    hp = jnp.pad(h, ((0, 0), (0, 0), (PAD, PAD)))
    acc = sum(hp[:, :, k:k + L] * wdw[None, :, k, None] for k in range(K))
    dw = _hardswish(acc + bdw[None, :, None])
    s = jnp.mean(dw, axis=2)
    t = jnp.maximum(jnp.einsum('qe,ne->nq', sew1, s, precision=hi) + seb1[None, :], 0.0)
    sc = _hardsigmoid(jnp.einsum('eq,nq->ne', sew2, t, precision=hi) + seb2[None, :])
    dw = dw * sc[:, :, None]
    out = jnp.einsum('oe,nel->nol', w3, dw, precision=hi) + b3[None, :, None]
    if USE_RES:
        out = out + x_ncl
    return out


if __name__ == "__main__":
    key = jax.random.PRNGKey(0)
    kx1, kx2, kp = jax.random.split(key, 3)

    params = init_params(kp)
    packed = pack_params(params)

    # --- test 1: module-sized input (single L tile) ---
    N, L = 2, 16
    x1 = jax.random.normal(kx1, (N, CIN, L), jnp.float32)     # PyTorch NCL input
    out1 = jax.block_until_ready(inverted_residual(x1, packed))
    np.testing.assert_allclose(np.asarray(out1), np.asarray(reference(x1, params)),
                               rtol=1e-3, atol=1e-3)

    # --- test 2: multi-tile L (exercises halos + cross-tile SE accumulation) ---
    N2, L2 = 2, 300
    x2 = jax.random.normal(kx2, (N2, CIN, L2), jnp.float32)
    out2 = jax.block_until_ready(inverted_residual(x2, packed, l_tile=128))
    np.testing.assert_allclose(np.asarray(out2), np.asarray(reference(x2, params)),
                               rtol=1e-3, atol=1e-3)

    print("KERNEL_OK")
</pallas_src>

<mosaic_0001>
module attributes {stable_mosaic.version = 11 : i64} {
  func.func @inverted_residual_kernel(%arg0: i32, %arg1: i32, %arg2: i32, %arg3: memref<1x8x128xf32, #tpu.memory_space<vmem>>, %arg4: memref<1x8x128xf32, #tpu.memory_space<vmem>>, %arg5: memref<1x8x128xf32, #tpu.memory_space<vmem>>, %arg6: memref<136x16xf32, #tpu.memory_space<vmem>>, %arg7: memref<1x8x128xf32, #tpu.memory_space<vmem>>, %arg8: memref<16x1xf32, #tpu.memory_space<vmem>>, %arg9: memref<16x1xf32, #tpu.memory_space<vmem>>) attributes {dimension_semantics = [#tpu.dimension_semantics<parallel>, #tpu.dimension_semantics<arbitrary>, #tpu.dimension_semantics<arbitrary>], iteration_bounds = array<i64: 2, 2, 1>, scalar_prefetch = 0 : i64, scratch_operands = 2 : i64, tpu.core_type = #tpu.core_type<tc>, window_params = [{transform_indices = @transform_0, window_bounds = array<i64: 1, 8, 128>}, {transform_indices = @transform_1, window_bounds = array<i64: 1, 8, 128>}, {transform_indices = @transform_2, window_bounds = array<i64: 1, 8, 128>}, {pipeline_mode = #tpu.pipeline_mode<synchronous>, transform_indices = @transform_3, window_bounds = array<i64: 136, 16>}, {transform_indices = @transform_4, window_bounds = array<i64: 1, 8, 128>}]} {
    %c0 = arith.constant 0 : index
    %c0_0 = arith.constant 0 : index
    %0 = vector.load %arg6[%c0, %c0_0] : memref<136x16xf32, #tpu.memory_space<vmem>>, vector<16x8xf32>
    %c16 = arith.constant 16 : index
    %c0_1 = arith.constant 0 : index
    %1 = vector.load %arg6[%c16, %c0_1] : memref<136x16xf32, #tpu.memory_space<vmem>>, vector<16x1xf32>
    %c32 = arith.constant 32 : index
    %c0_2 = arith.constant 0 : index
    %2 = vector.load %arg6[%c32, %c0_2] : memref<136x16xf32, #tpu.memory_space<vmem>>, vector<16x3xf32>
    %c48 = arith.constant 48 : index
    %c0_3 = arith.constant 0 : index
    %3 = vector.load %arg6[%c48, %c0_3] : memref<136x16xf32, #tpu.memory_space<vmem>>, vector<16x1xf32>
    %c64 = arith.constant 64 : index
    %c0_4 = arith.constant 0 : index
    %4 = vector.load %arg6[%c64, %c0_4] : memref<136x16xf32, #tpu.memory_space<vmem>>, vector<16x8xf32>
    %c80 = arith.constant 80 : index
    %c0_5 = arith.constant 0 : index
    %5 = vector.load %arg6[%c80, %c0_5] : memref<136x16xf32, #tpu.memory_space<vmem>>, vector<1x8xf32>
    %c88 = arith.constant 88 : index
    %c0_6 = arith.constant 0 : index
    %6 = vector.load %arg6[%c88, %c0_6] : memref<136x16xf32, #tpu.memory_space<vmem>>, vector<16x8xf32>
    %c104 = arith.constant 104 : index
    %c0_7 = arith.constant 0 : index
    %7 = vector.load %arg6[%c104, %c0_7] : memref<136x16xf32, #tpu.memory_space<vmem>>, vector<16x1xf32>
    %c120 = arith.constant 120 : index
    %c0_8 = arith.constant 0 : index
    %8 = vector.load %arg6[%c120, %c0_8] : memref<136x16xf32, #tpu.memory_space<vmem>>, vector<8x16xf32>
    %c128 = arith.constant 128 : index
    %c0_9 = arith.constant 0 : index
    %9 = vector.load %arg6[%c128, %c0_9] : memref<136x16xf32, #tpu.memory_space<vmem>>, vector<8x1xf32>
    %c0_10 = arith.constant 0 : index
    %c0_11 = arith.constant 0 : index
    %c0_12 = arith.constant 0 : index
    %10 = vector.load %arg4[%c0_10, %c0_11, %c0_12] : memref<1x8x128xf32, #tpu.memory_space<vmem>>, vector<1x8x128xf32>
    %11 = vector.shape_cast %10 : vector<1x8x128xf32> to vector<8x128xf32>
    %12 = tpu.iota {dimensions = array<i32: 1>} : vector<1x128xi32>
    %c128_i32 = arith.constant 128 : i32
    %13 = arith.muli %arg2, %c128_i32 : i32
    %14 = vector.broadcast %13 : i32 to vector<1x128xi32>
    %15 = arith.addi %12, %14 : vector<1x128xi32>
    %c1_i32 = arith.constant 1 : i32
    %16 = tpu.dynamic_rotate %11 by %c1_i32 dim 1 : vector<8x128xf32>, i32 -> vector<8x128xf32>
    %c0_i32 = arith.constant 0 : i32
    %17 = vector.broadcast %c0_i32 : i32 to vector<1x128xi32>
    %18 = arith.cmpi eq, %12, %17 : vector<1x128xi32>
    %c0_13 = arith.constant 0 : index
    %c0_14 = arith.constant 0 : index
    %c127 = arith.constant 127 : index
    %19 = vector.load %arg3[%c0_13, %c0_14, %c127] : memref<1x8x128xf32, #tpu.memory_space<vmem>>, vector<1x8x1xf32>
    %20 = vector.shape_cast %19 : vector<1x8x1xf32> to vector<8x1xf32>
    %21 = vector.shape_cast %18 : vector<1x128xi1> to vector<1x128xi1>
    %22 = vector.broadcast %21 : vector<1x128xi1> to vector<8x128xi1>
    %23 = vector.shape_cast %20 : vector<8x1xf32> to vector<8x1xf32>
    %24 = vector.broadcast %23 : vector<8x1xf32> to vector<8x128xf32>
    %25 = arith.select %22, %24, %16 : vector<8x128xi1>, vector<8x128xf32>
    %c127_i32 = arith.constant 127 : i32
    %26 = tpu.dynamic_rotate %11 by %c127_i32 dim 1 : vector<8x128xf32>, i32 -> vector<8x128xf32>
    %c127_i32_15 = arith.constant 127 : i32
    %27 = vector.broadcast %c127_i32_15 : i32 to vector<1x128xi32>
    %28 = arith.cmpi eq, %12, %27 : vector<1x128xi32>
    %c0_16 = arith.constant 0 : index
    %c0_17 = arith.constant 0 : index
    %c0_18 = arith.constant 0 : index
    %29 = vector.load %arg5[%c0_16, %c0_17, %c0_18] : memref<1x8x128xf32, #tpu.memory_space<vmem>>, vector<1x8x1xf32>
    %30 = vector.shape_cast %29 : vector<1x8x1xf32> to vector<8x1xf32>
    %31 = vector.shape_cast %28 : vector<1x128xi1> to vector<1x128xi1>
    %32 = vector.broadcast %31 : vector<1x128xi1> to vector<8x128xi1>
    %33 = vector.shape_cast %30 : vector<8x1xf32> to vector<8x1xf32>
    %34 = vector.broadcast %33 : vector<8x1xf32> to vector<8x128xf32>
    %35 = arith.select %32, %34, %26 : vector<8x128xi1>, vector<8x128xf32>
    %cst = arith.constant dense<0.000000e+00> : vector<16x128xf32>
    %36 = tpu.matmul %0, %11, %cst {dimension_numbers = #tpu.dot_dimension_numbers<[1], [0], [0], [1], [0, 0, 1, 1], [], []>} : vector<16x8xf32>, vector<8x128xf32>, vector<16x128xf32> -> vector<16x128xf32>
    %37 = vector.broadcast %1 : vector<16x1xf32> to vector<16x128xf32>
    %38 = arith.addf %36, %37 : vector<16x128xf32>
    %cst_19 = arith.constant 3.000000e+00 : f32
    %39 = vector.broadcast %cst_19 : f32 to vector<16x128xf32>
    %40 = arith.addf %38, %39 : vector<16x128xf32>
    %cst_20 = arith.constant 0.000000e+00 : f32
    %cst_21 = arith.constant 6.000000e+00 : f32
    %41 = vector.broadcast %cst_20 : f32 to vector<16x128xf32>
    %42 = arith.maximumf %41, %40 : vector<16x128xf32>
    %43 = vector.broadcast %cst_21 : f32 to vector<16x128xf32>
    %44 = arith.minimumf %43, %42 : vector<16x128xf32>
    %45 = arith.mulf %38, %44 : vector<16x128xf32>
    %c0_i32_22 = arith.constant 0 : i32
    %46 = vector.broadcast %c0_i32_22 : i32 to vector<1x128xi32>
    %47 = arith.cmpi eq, %15, %46 : vector<1x128xi32>
    %cst_23 = arith.constant dense<0.000000e+00> : vector<16x128xf32>
    %48 = tpu.matmul %0, %25, %cst_23 {dimension_numbers = #tpu.dot_dimension_numbers<[1], [0], [0], [1], [0, 0, 1, 1], [], []>} : vector<16x8xf32>, vector<8x128xf32>, vector<16x128xf32> -> vector<16x128xf32>
    %49 = vector.broadcast %1 : vector<16x1xf32> to vector<16x128xf32>
    %50 = arith.addf %48, %49 : vector<16x128xf32>
    %cst_24 = arith.constant 3.000000e+00 : f32
    %51 = vector.broadcast %cst_24 : f32 to vector<16x128xf32>
    %52 = arith.addf %50, %51 : vector<16x128xf32>
    %cst_25 = arith.constant 0.000000e+00 : f32
    %cst_26 = arith.constant 6.000000e+00 : f32
    %53 = vector.broadcast %cst_25 : f32 to vector<16x128xf32>
    %54 = arith.maximumf %53, %52 : vector<16x128xf32>
    %55 = vector.broadcast %cst_26 : f32 to vector<16x128xf32>
    %56 = arith.minimumf %55, %54 : vector<16x128xf32>
    %57 = arith.mulf %50, %56 : vector<16x128xf32>
    %cst_27 = arith.constant 0.000000e+00 : f32
    %58 = vector.shape_cast %47 : vector<1x128xi1> to vector<1x128xi1>
    %59 = vector.broadcast %58 : vector<1x128xi1> to vector<16x128xi1>
    %60 = vector.broadcast %cst_27 : f32 to vector<16x128xf32>
    %61 = arith.select %59, %60, %57 : vector<16x128xi1>, vector<16x128xf32>
    %c15_i32 = arith.constant 15 : i32
    %62 = vector.broadcast %c15_i32 : i32 to vector<1x128xi32>
    %63 = arith.cmpi eq, %15, %62 : vector<1x128xi32>
    %cst_28 = arith.constant dense<0.000000e+00> : vector<16x128xf32>
    %64 = tpu.matmul %0, %35, %cst_28 {dimension_numbers = #tpu.dot_dimension_numbers<[1], [0], [0], [1], [0, 0, 1, 1], [], []>} : vector<16x8xf32>, vector<8x128xf32>, vector<16x128xf32> -> vector<16x128xf32>
    %65 = vector.broadcast %1 : vector<16x1xf32> to vector<16x128xf32>
    %66 = arith.addf %64, %65 : vector<16x128xf32>
    %cst_29 = arith.constant 3.000000e+00 : f32
    %67 = vector.broadcast %cst_29 : f32 to vector<16x128xf32>
    %68 = arith.addf %66, %67 : vector<16x128xf32>
    %cst_30 = arith.constant 0.000000e+00 : f32
    %cst_31 = arith.constant 6.000000e+00 : f32
    %69 = vector.broadcast %cst_30 : f32 to vector<16x128xf32>
    %70 = arith.maximumf %69, %68 : vector<16x128xf32>
    %71 = vector.broadcast %cst_31 : f32 to vector<16x128xf32>
    %72 = arith.minimumf %71, %70 : vector<16x128xf32>
    %73 = arith.mulf %66, %72 : vector<16x128xf32>
    %cst_32 = arith.constant 0.000000e+00 : f32
    %74 = vector.shape_cast %63 : vector<1x128xi1> to vector<1x128xi1>
    %75 = vector.broadcast %74 : vector<1x128xi1> to vector<16x128xi1>
    %76 = vector.broadcast %cst_32 : f32 to vector<16x128xf32>
    %77 = arith.select %75, %76, %73 : vector<16x128xi1>, vector<16x128xf32>
    %78 = vector.extract_strided_slice %2 {offsets = [0, 0], sizes = [16, 1], strides = [1, 1]} : vector<16x3xf32> to vector<16x1xf32>
    %79 = vector.broadcast %78 : vector<16x1xf32> to vector<16x128xf32>
    %80 = arith.mulf %61, %79 : vector<16x128xf32>
    %81 = vector.extract_strided_slice %2 {offsets = [0, 1], sizes = [16, 1], strides = [1, 1]} : vector<16x3xf32> to vector<16x1xf32>
    %82 = vector.broadcast %81 : vector<16x1xf32> to vector<16x128xf32>
    %83 = arith.mulf %45, %82 : vector<16x128xf32>
    %84 = arith.addf %80, %83 : vector<16x128xf32>
    %85 = vector.extract_strided_slice %2 {offsets = [0, 2], sizes = [16, 1], strides = [1, 1]} : vector<16x3xf32> to vector<16x1xf32>
    %86 = vector.broadcast %85 : vector<16x1xf32> to vector<16x128xf32>
    %87 = arith.mulf %77, %86 : vector<16x128xf32>
    %88 = arith.addf %84, %87 : vector<16x128xf32>
    %89 = vector.broadcast %3 : vector<16x1xf32> to vector<16x128xf32>
    %90 = arith.addf %88, %89 : vector<16x128xf32>
    %cst_33 = arith.constant 3.000000e+00 : f32
    %91 = vector.broadcast %cst_33 : f32 to vector<16x128xf32>
    %92 = arith.addf %90, %91 : vector<16x128xf32>
    %cst_34 = arith.constant 0.000000e+00 : f32
    %cst_35 = arith.constant 6.000000e+00 : f32
    %93 = vector.broadcast %cst_34 : f32 to vector<16x128xf32>
    %94 = arith.maximumf %93, %92 : vector<16x128xf32>
    %95 = vector.broadcast %cst_35 : f32 to vector<16x128xf32>
    %96 = arith.minimumf %95, %94 : vector<16x128xf32>
    %97 = arith.mulf %90, %96 : vector<16x128xf32>
    %c0_i32_36 = arith.constant 0 : i32
    %98 = arith.cmpi eq, %arg1, %c0_i32_36 : i32
    %99 = arith.extui %98 : i1 to i32
    %c0_i32_37 = arith.constant 0 : i32
    %100 = arith.cmpi ne, %99, %c0_i32_37 : i32
    scf.if %100 {
      %c0_i32_40 = arith.constant 0 : i32
      %104 = arith.cmpi eq, %arg2, %c0_i32_40 : i32
      %105 = arith.extui %104 : i1 to i32
      %c0_i32_41 = arith.constant 0 : i32
      %106 = arith.cmpi ne, %105, %c0_i32_41 : i32
      scf.if %106 {
        %cst_48 = arith.constant 0.000000e+00 : f32
        %118 = vector.broadcast %cst_48 : f32 to vector<16x1xf32>
        %c0_49 = arith.constant 0 : index
        %c0_50 = arith.constant 0 : index
        %119 = vector.load %arg8[%c0_49, %c0_50] : memref<16x1xf32, #tpu.memory_space<vmem>>, vector<16x1xf32>
        tpu.vector_store %arg8[%c0_49, %c0_50], %118 {strides = array<i32>} : memref<16x1xf32, #tpu.memory_space<vmem>>, vector<16x1xf32>,
      } else {
      }
      %c0_42 = arith.constant 0 : index
      %c0_43 = arith.constant 0 : index
      %107 = vector.load %arg8[%c0_42, %c0_43] : memref<16x1xf32, #tpu.memory_space<vmem>>, vector<16x1xf32>
      %c16_i32 = arith.constant 16 : i32
      %108 = vector.broadcast %c16_i32 : i32 to vector<1x128xi32>
      %109 = arith.cmpi slt, %15, %108 : vector<1x128xi32>
      %cst_44 = arith.constant 0.000000e+00 : f32
      %110 = vector.shape_cast %109 : vector<1x128xi1> to vector<1x128xi1>
      %111 = vector.broadcast %110 : vector<1x128xi1> to vector<16x128xi1>
      %112 = vector.broadcast %cst_44 : f32 to vector<16x128xf32>
      %113 = arith.select %111, %97, %112 : vector<16x128xi1>, vector<16x128xf32>
      %cst_45 = arith.constant dense<0.000000e+00> : vector<16xf32>
      %114 = vector.multi_reduction <add>, %113, %cst_45 [1] : vector<16x128xf32> to vector<16xf32>
      %115 = vector.shape_cast %114 : vector<16xf32> to vector<16x1xf32>
      %116 = arith.addf %107, %115 : vector<16x1xf32>
      %c0_46 = arith.constant 0 : index
      %c0_47 = arith.constant 0 : index
      %117 = vector.load %arg8[%c0_46, %c0_47] : memref<16x1xf32, #tpu.memory_space<vmem>>, vector<16x1xf32>
      tpu.vector_store %arg8[%c0_46, %c0_47], %116 {strides = array<i32>} : memref<16x1xf32, #tpu.memory_space<vmem>>, vector<16x1xf32>,
    } else {
    }
    %c1_i32_38 = arith.constant 1 : i32
    %101 = arith.cmpi eq, %arg1, %c1_i32_38 : i32
    %102 = arith.extui %101 : i1 to i32
    %c0_i32_39 = arith.constant 0 : i32
    %103 = arith.cmpi ne, %102, %c0_i32_39 : i32
    scf.if %103 {
      %c0_i32_40 = arith.constant 0 : i32
      %104 = arith.cmpi eq, %arg2, %c0_i32_40 : i32
      %105 = arith.extui %104 : i1 to i32
      %c0_i32_41 = arith.constant 0 : i32
      %106 = arith.cmpi ne, %105, %c0_i32_41 : i32
      scf.if %106 {
        %c0_48 = arith.constant 0 : index
        %c0_49 = arith.constant 0 : index
        %117 = vector.load %arg8[%c0_48, %c0_49] : memref<16x1xf32, #tpu.memory_space<vmem>>, vector<16x1xf32>
        %cst_50 = arith.constant 6.250000e-02 : f32
        %118 = vector.broadcast %cst_50 : f32 to vector<16x1xf32>
        %119 = arith.mulf %117, %118 : vector<16x1xf32>
        %120 = vector.broadcast %119 : vector<16x1xf32> to vector<16x8xf32>
        %121 = arith.mulf %4, %120 : vector<16x8xf32>
        %cst_51 = arith.constant dense<0.000000e+00> : vector<8xf32>
        %122 = vector.multi_reduction <add>, %121, %cst_51 [0] : vector<16x8xf32> to vector<8xf32>
        %123 = vector.shape_cast %122 : vector<8xf32> to vector<1x8xf32>
        %124 = arith.addf %123, %5 : vector<1x8xf32>
        %cst_52 = arith.constant 0.000000e+00 : f32
        %125 = vector.broadcast %cst_52 : f32 to vector<1x8xf32>
        %126 = arith.maximumf %124, %125 : vector<1x8xf32>
        %127 = vector.broadcast %126 : vector<1x8xf32> to vector<16x8xf32>
        %128 = arith.mulf %6, %127 : vector<16x8xf32>
        %cst_53 = arith.constant dense<0.000000e+00> : vector<16xf32>
        %129 = vector.multi_reduction <add>, %128, %cst_53 [1] : vector<16x8xf32> to vector<16xf32>
        %130 = vector.shape_cast %129 : vector<16xf32> to vector<16x1xf32>
        %131 = arith.addf %130, %7 : vector<16x1xf32>
        %cst_54 = arith.constant 3.000000e+00 : f32
        %132 = vector.broadcast %cst_54 : f32 to vector<16x1xf32>
        %133 = arith.addf %131, %132 : vector<16x1xf32>
        %cst_55 = arith.constant 0.000000e+00 : f32
        %cst_56 = arith.constant 6.000000e+00 : f32
        %134 = vector.broadcast %cst_55 : f32 to vector<16x1xf32>
        %135 = arith.maximumf %134, %133 : vector<16x1xf32>
        %136 = vector.broadcast %cst_56 : f32 to vector<16x1xf32>
        %137 = arith.minimumf %136, %135 : vector<16x1xf32>
        %cst_57 = arith.constant 0.166666672 : f32
        %138 = vector.broadcast %cst_57 : f32 to vector<16x1xf32>
        %139 = arith.mulf %137, %138 : vector<16x1xf32>
        %c0_58 = arith.constant 0 : index
        %c0_59 = arith.constant 0 : index
        %140 = vector.load %arg9[%c0_58, %c0_59] : memref<16x1xf32, #tpu.memory_space<vmem>>, vector<16x1xf32>
        tpu.vector_store %arg9[%c0_58, %c0_59], %139 {strides = array<i32>} : memref<16x1xf32, #tpu.memory_space<vmem>>, vector<16x1xf32>,
      } else {
      }
      %c0_42 = arith.constant 0 : index
      %c0_43 = arith.constant 0 : index
      %107 = vector.load %arg9[%c0_42, %c0_43] : memref<16x1xf32, #tpu.memory_space<vmem>>, vector<16x1xf32>
      %108 = vector.broadcast %107 : vector<16x1xf32> to vector<16x128xf32>
      %109 = arith.mulf %97, %108 : vector<16x128xf32>
      %cst_44 = arith.constant dense<0.000000e+00> : vector<8x128xf32>
      %110 = tpu.matmul %8, %109, %cst_44 {dimension_numbers = #tpu.dot_dimension_numbers<[1], [0], [0], [1], [0, 0, 1, 1], [], []>} : vector<8x16xf32>, vector<16x128xf32>, vector<8x128xf32> -> vector<8x128xf32>
      %111 = vector.broadcast %9 : vector<8x1xf32> to vector<8x128xf32>
      %112 = arith.addf %110, %111 : vector<8x128xf32>
      %113 = arith.addf %112, %11 : vector<8x128xf32>
      %c0_45 = arith.constant 0 : index
      %c0_46 = arith.constant 0 : index
      %c0_47 = arith.constant 0 : index
      %114 = vector.load %arg7[%c0_45, %c0_46, %c0_47] : memref<1x8x128xf32, #tpu.memory_space<vmem>>, vector<1x8x128xf32>
      %115 = vector.shape_cast %114 : vector<1x8x128xf32> to vector<8x128xf32>
      %116 = vector.shape_cast %113 : vector<8x128xf32> to vector<1x8x128xf32>
      tpu.vector_store %arg7[%c0_45, %c0_46, %c0_47], %116 {strides = array<i32>} : memref<1x8x128xf32, #tpu.memory_space<vmem>>, vector<1x8x128xf32>,
    } else {
    }
    return
  }
  func.func @transform_0(%arg0: i32, %arg1: i32, %arg2: i32) -> (i32, i32, i32) {
    %c1_i32 = arith.constant 1 : i32
    %0 = arith.subi %arg2, %c1_i32 : i32
    %c0_i32 = arith.constant 0 : i32
    %1 = arith.maxsi %0, %c0_i32 : i32
    %c0_i32_0 = arith.constant 0 : i32
    %c0_i32_1 = arith.constant 0 : i32
    return %arg0, %c0_i32_0, %1 : i32, i32, i32
  }
  func.func @transform_1(%arg0: i32, %arg1: i32, %arg2: i32) -> (i32, i32, i32) {
    %c0_i32 = arith.constant 0 : i32
    %c0_i32_0 = arith.constant 0 : i32
    return %arg0, %c0_i32, %arg2 : i32, i32, i32
  }
  func.func @transform_2(%arg0: i32, %arg1: i32, %arg2: i32) -> (i32, i32, i32) {
    %c1_i32 = arith.constant 1 : i32
    %0 = arith.addi %arg2, %c1_i32 : i32
    %c0_i32 = arith.constant 0 : i32
    %1 = arith.minsi %0, %c0_i32 : i32
    %c0_i32_0 = arith.constant 0 : i32
    %c0_i32_1 = arith.constant 0 : i32
    return %arg0, %c0_i32_0, %1 : i32, i32, i32
  }
  func.func @transform_3(%arg0: i32, %arg1: i32, %arg2: i32) -> (i32, i32) {
    %c0_i32 = arith.constant 0 : i32
    %c0_i32_0 = arith.constant 0 : i32
    %c0_i32_1 = arith.constant 0 : i32
    return %c0_i32, %c0_i32_0 : i32, i32
  }
  func.func @transform_4(%arg0: i32, %arg1: i32, %arg2: i32) -> (i32, i32, i32) {
    %0 = arith.muli %arg2, %arg1 : i32
    %c0_i32 = arith.constant 0 : i32
    %c0_i32_0 = arith.constant 0 : i32
    return %arg0, %c0_i32, %0 : i32, i32, i32
  }
}

</mosaic_0001>

<bundles_post_ra>
// kernel: tpu_custom_call.1
= control target key start
LH: loop header
LB: loop body
LE: loop exit
PB: predicated region body
PF: predicated region fallthrough
CT: control target
= control target key end

     0   :  { %9 = vsyncpa [#allocation5], 0  ;;  %s1558_s0 = inlined_call_operand.vmem [shape: f32[2,8,128], index: 0, kind: input, shape index: {}]   ;;  %s1559_s1 = inlined_call_operand.vmem [shape: f32[2,8,128], index: 1, kind: input, shape index: {}]   ;;  %s1560_s2 = inlined_call_operand.vmem [shape: f32[2,8,128], index: 2, kind: input, shape index: {}]   ;;  %s1561_s3 = inlined_call_operand.vmem [shape: f32[136,16], index: 3, kind: input, shape index: {}]   ;;  %s1562_s4 = inlined_call_operand.hbm [shape: f32[2,8,128], index: 4, kind: output, shape index: {}]  }
   0x1   :  { %11 = vsyncpa [#allocation5 + $0x1], 0  ;;  %s1294_s15 = smov 0   ;;  %s1296_s16 = smov 0  }
   0x2   :  { %s1298_s17 = smov 0   ;;  %s1300_s18 = smov 0  }
   0x3   :  { %s1302_s19 = smov 0   ;;  %s1304_s20 = smov 0  }
   0x4   :  { %s1306_s21 = smov 0   ;;  %s1308_s22 = smov 0  }
   0x5 LB: > { %s1010_s23 = sadd.s32 4294967295, %s1255_s22   ;;  %s1011_s24 = sadd.s32 4294967294, %s1255_s22   ;;  %s1255_s22 = sphi %s1308_s22, %s17_s22   ;;  %s1251_s21 = sphi %s1306_s21, %s1576_s21   ;;  %s1247_s20 = sphi %s1304_s20, %s1575_s20   ;;  %s1243_s19 = sphi %s1302_s19, %s1574_s19   ;;  %s1239_s18 = sphi %s1300_s18, %s1573_s18   ;;  %s1235_s17 = sphi %s1298_s17, %s1572_s17   ;;  %s1231_s16 = sphi %s1296_s16, %s1571_s16   ;;  %s1227_s15 = sphi %s1294_s15, %s1570_s15  }
   0x6   : > { %s32_s25 = sadd.s32 1, %s1247_s20  ;;  %s36_s26 = sadd.s32 1, %s1251_s21 }
   0x7   : > { %p34_p0 = scmp.ge.s32.totalorder %s32_s25, 2  ;;  %p174_p1 = scmp.ne.s32.totalorder %s1235_s17, %s1231_s16 }
   0x8   : > { %p175_p2 = scmp.eq.s32.totalorder %s1010_s23, 3  ;;  %p180_p4 = scmp.ne.s32.totalorder %s1231_s16, %s1227_s15 }
   0x9   : > { %s1578_s25 = smov (%p34_p0, %s32_s25), 0  ;;  %s1580_s26 = smov (!%p34_p0, %s36_s26), %s1251_s21 }
   0xa   : > { %p1343_p3 = por %p175_p2, %p174_p1  ;;  %p38_p5 = scmp.ge.s32.totalorder %s1580_s26, 2 }
   0xb   : > { %p181_p6 = scmp.eq.s32.totalorder %s1011_s24, 3  ;;  %p1014_p7 = scmp.ge.s32.totalorder %s1255_s22, 1 }
   0xc   : > { %p244_p8 = scmp.lt.s32.totalorder %s1255_s22, 5  ;;  %s1582_s26 = smov (%p38_p5, %s1580_s26), 0 }
   0xd   : > { %1566 = sst [smem:[#allocation7_spill]] %s1582_s26  ;;  %p1353_p9 = por %p181_p6, %p180_p4 }
   0xe   : > { %p245_p10 = pnand %p1014_p7, %p244_p8  ;;  %s159_s29 = ssub.s32 %s1251_s21, %s1582_s26 }
   0xf   : > { %s164_s30 = sadd.s32 1, %s1235_s17  ;;  %p162_p11 = scmp.eq.s32.totalorder %s159_s29, 0  ;;  %v1368_v0 = vld [vmem:[%s1561_s3 + $0x40] sm:$0xff] (!%p245_p10)  ;;  %v1373_v1 = vld [vmem:[%s1561_s3 + $0x48] sm:$0xff] (!%p245_p10)  ;;  %v1378_v2 = vld [vmem:[%s1561_s3 + $0x58] sm:$0xff] (!%p245_p10)  ;;  %v1257_v3 = vmov (!%p245_p10), 127   ;;  %v344_v24 = vlaneseq (!%p245_p10) }
  0x10   : > { %248 = sbr.rel (%p245_p10) target bundleno = 1257 (0x4e9), region = 36  ;;  %s1563_s6 = sand.u32 (!%p245_p10), 1, %s1231_s16   ;;  %1151 = vset.pattern.permute.xlu0 (!%p245_p10), %v1257_v3  ;;  %v1387_v4 = vld [vmem:[%s1561_s3 + $0x50] sm:$0x1] (!%p245_p10)  ;;  %v1392_v5 = vld [vmem:[%s1561_s3 + $0x60] sm:$0xff] (!%p245_p10)  ;;  %v1397_v6 = vld [vmem:[%s1561_s3 + $0x68] sm:$0xff] (!%p245_p10) }
  0x11   : > { %s1361_s5 = scalar_select %p162_p11, %s1235_s17, %s164_s30  }
  0x12   : > { %p295_p12 = scmp.lt.s32.totalorder (!%p245_p10), %s1243_s19, 1  ;;  %s1382_s13 = sshll.u32 (!%p245_p10), %s1563_s6, 3  ;;  %vm383_vm0 = vcmask (!%p245_p10), 64512   ;;  %v1402_v7 = vld [vmem:[%s1561_s3 + $0x70] sm:$0xff] (!%p245_p10)  ;;  %v1407_v8 = vld [vmem:[%s1561_s3 + $0x78] sm:$0xff] (!%p245_p10)  ;;  %v1412_v9 = vld [vmem:[%s1561_s3 + $0x80] sm:$0xff] (!%p245_p10) }
  0x13   : > { %v326_v10 = vld [vmem:[%s1561_s3] sm:$0xff] (!%p245_p10)  ;;  %v1258_v11 = vmov (!%p245_p10), 0   ;;  %v327_v14 = vld [vmem:[%s1561_s3 + $0x8] sm:$0xff] (!%p245_p10)  ;;  %s1260_s7 = smov (!%p245_p10), 127   ;;  %v329_v16 = vld [vmem:[%s1561_s3 + $0x18] sm:$0xff] (!%p245_p10)  ;;  %v1261_v19 = vmov (!%p245_p10), 1  }
  0x14   : > { %1153 = vset.pattern.permute.xlu1 (!%p245_p10), %v1258_v11  ;;  %1046 = vmatprep.mubr.msk.f32.mxu0 (!%p245_p10), %vm383_vm0, %v326_v10  ;;  %v331_v17 = vld [vmem:[%s1561_s3 + $0x28] sm:$0xff] (!%p245_p10)  ;;  %v328_v18 = vld [vmem:[%s1561_s3 + $0x10] sm:$0xff] (!%p245_p10)  ;;  %v330_v20 = vld [vmem:[%s1561_s3 + $0x20] sm:$0xff] (!%p245_p10)  ;;  %v1262_v21 = vmov (!%p245_p10), 2   ;;  %v1461_v25 = vand.u32 (!%p245_p10), 127, %v344_v24  ;;  %p1025_p13 = scmp.ne.s32.totalorder (!%p245_p10), %s1239_s18, 0 }
  0x15   : > { %1051 = vmatprep.mubr.msk.f32.mxu1 (!%p245_p10), %vm383_vm0, %v326_v10  ;;  %v332_v22 = vld [vmem:[%s1561_s3 + $0x30] sm:$0xff] (!%p245_p10)  ;;  %v333_v23 = vld [vmem:[%s1561_s3 + $0x38] sm:$0xff] (!%p245_p10) }
  0x16   : > { %vm351_vm1 = vcmp.eq.s32.totalorder (!%p245_p10), %v1461_v25, 0  ;;  %vm363_vm2 = vcmp.eq.s32.totalorder (!%p245_p10), %v1461_v25, 127  ;;  %vm561_vm3 = vcmp.eq.s32.totalorder (!%p245_p10), %v1461_v25, 15 }
  0x17   : > { %s296_s23 = scalar_select %p295_p12, %s1243_s19, 1 }
  0x18   : > { %vm718_vm4 = vcmp.lt.s32.totalorder (!%p1025_p13), %v1461_v25, 16  ;;  %vm713_vm5 = vcmask (!%p1025_p13), 7168  }
  0x19   : > { %s1016_s30 = sshll.u32 %s296_s23, 3  ;;  %s1259_s23 = smov 1  }
  0x1a   : > { %s311_s9 = scalar_lea.vmem %s1559_s1, %s1016_s30  ;;  %s301_s12 = scalar_lea.vmem %s1558_s0, %s1016_s30 }
  0x1b   : > { %v1428_v12 = vld [vmem:[%s311_s9] sm:$0xff]  ;;  %s321_s26 = scalar_lea.vmem %s1560_s2, %s1016_s30 }
  0x1c   : > { %v352_v13 = vld [vmem:[%s301_s12] sm:$0xff]  ;;  %1044 = vmatprep.subr.mxu0 %v1428_v12  ;;  %349 = vrot.lane.b32.xlu1 %v1428_v12, %s1259_s23 }
  0x1d   : > { %357 = vperm.xlu0 %1151, %v352_v13   ;;  %1045 = vmatpush3.msra.mxu0 %v1428_v12  ;;  %v364_v15 = vld [vmem:[%s321_s26] sm:$0xff] }
  0x1e   : > { %1047 = vmatmul.mubr.msk.f32.vlgmr.msra.gmra.mrb[0].mxu0 %vm383_vm0, %v327_v14 }
  0x1f   : > { %1056 = vmatprep.mubr.msk.f32.mxu0 %vm383_vm0, %v326_v10 }
  0x20   : > { %361 = vrot.lane.b32.xlu1 %v1428_v12, %s1260_s7  ;;  %s291_s7 = scalar_lea.vmem [#allocation4], %s1382_s13 }
  0x21   : > { %1152 = vset.pattern.permute.xlu0 %v1258_v11 }
  0x22   : > { %369 = vperm.xlu0 %1152, %v364_v15  }
  0x24   : > { %375 = vperm.xlu1 %1153, %v328_v18  }
  0x26   : > { %380 = vperm.xlu0 %1152, %v329_v16  }
  0x28   : > { %651 = vperm.xlu1 %1153, %v330_v20  }
  0x2a   : > { %656 = vperm.xlu0 %1152, %v331_v17  }
  0x2c   : > { %1154 = vset.pattern.permute.xlu1 %v1261_v19 }
  0x2d   : > { %662 = vperm.xlu1 %1154, %v330_v20  }
  0x2e   : > { %1155 = vset.pattern.permute.xlu0 %v1261_v19 }
  0x2f   : > { %666 = vperm.xlu0 %1155, %v331_v17  }
  0x31   : > { %1156 = vset.pattern.permute.xlu1 %v1262_v21 }
  0x32   : > { %674 = vperm.xlu1 %1156, %v330_v20  }
  0x33   : > { %1157 = vset.pattern.permute.xlu0 %v1258_v11 }
  0x34   : > { %687 = vperm.xlu0 %1157, %v332_v22  }
  0x36   : > { %678 = vperm.xlu1 %1156, %v331_v17  }
  0x3a   : > { %1158 = vset.pattern.permute.xlu1 %v1258_v11 }
  0x3b   : > { %692 = vperm.xlu1 %1158, %v333_v23  }
  0x8e   : > { %v350_v26 = vpop.permute.xlu1 %349 }
  0x92   : > { %v362_v29 = vpop.permute.xlu1 %361 }
  0x9c   : > { %v358_v27 = vpop.permute.xlu0 %357 }
  0x9d   : > { %v360_v28 = vsel %vm351_vm1, %v358_v27, %v350_v26 }
  0x9e   : > { %1049 = vmatprep.subr.mxu1 %v360_v28 }
  0x9f   : > { %1050 = vmatpush3.msra.mxu1 %v360_v28 }
  0xa0   : > { %1052 = vmatmul.mubr.msk.f32.vlgmr.msra.gmra.mrb[0].mxu1 %vm383_vm0, %v327_v14 }
  0xa1   : > { %v370_v30 = vpop.permute.xlu0 %369 }
  0xa2   : > { %v372_v31 = vsel %vm363_vm2, %v370_v30, %v362_v29 }
  0xa3   : > { %1054 = vmatprep.subr.mxu0 %v372_v31  ;;  %v376_v34 = vpop.permute.xlu1 %375 }
  0xa4   : > { %1055 = vmatpush3.msra.mxu0 %v372_v31 }
  0xa5   : > { %1057 = vmatmul.mubr.msk.f32.vlgmr.msra.gmra.mrb[2].mxu0 %vm383_vm0, %v327_v14  ;;  %v381_v35 = vpop.permute.xlu0 %380 }
  0xa7   : > { %v652_v40 = vpop.permute.xlu1 %651 }
  0xa9   : > { %v657_v51 = vpop.permute.xlu0 %656 }
  0xac   : > { %v663_v50 = vpop.permute.xlu1 %662 }
  0xae   : > { %v667_v3 = vpop.permute.xlu0 %666 }
  0xb1   : > { %v675_v63 = vpop.permute.xlu1 %674 }
  0xb5   : > { %v679_v28 = vpop.permute.xlu1 %678 }
  0xf1   : > { %v1048_v32 = vpop.f32.mrb[0].mxu0 }
  0xf2   : > { %v456_v33 = vpop.f32.mrb[1].mxu0  ;;  %v462_v36 = vadd.f32 %v1048_v32, %v381_v35 }
  0xf3   : > { %v457_v37 = vadd.f32 %v456_v33, %v376_v34 }
  0xf4   : > { %v466_v38 = vadd.f32 3.0, %v462_v36 }
  0xf5   : > { %v465_v39 = vadd.f32 3.0, %v457_v37 }
  0xf6   : > { %v468_v41 = vmax.f32 %v466_v38, 0.0  ;;  %v688_v38 = vpop.permute.xlu0 %687 }
  0xf7   : > { %v467_v43 = vmax.f32 %v465_v39, 0.0 }
  0xf8   : > { %v470_v48 = vmin.f32 %v468_v41, 6.0 }
  0xf9   : > { %v469_v52 = vmin.f32 %v467_v43, 6.0 }
  0xfa   : > { %v472_v60 = vmul.f32 %v470_v48, %v462_v36  ;;  %v693_v36 = vpop.permute.xlu1 %692 }
  0xfb   : > { %v471_v11 = vmul.f32 %v469_v52, %v457_v37  ;;  %v1263_v52 = vmov (!%p1025_p13), 0.0  }
  0xfc   : > { %v670_v18 = vmul.f32 %v667_v3, %v472_v60  ;;  %714 = vst.msk [vmem:[#allocation2] sm:$0xff] (!%p1025_p13), %vm713_vm5, %v1263_v52  ;;  %715 = vst.msk [vmem:[#allocation2 + $0x8] sm:$0xff] (!%p1025_p13), %vm713_vm5, %v1263_v52 }
  0xfd   : > { %v669_v23 = vmul.f32 %v663_v50, %v471_v11 }
 0x173   : > { %v1053_v42 = vpop.f32.mrb[0].mxu1 }
 0x174   : > { %v546_v44 = vadd.f32 %v1053_v42, %v381_v35  ;;  %v540_v45 = vpop.f32.mrb[1].mxu1 }
 0x175   : > { %v541_v46 = vadd.f32 %v540_v45, %v376_v34 }
 0x176   : > { %v550_v47 = vadd.f32 3.0, %v546_v44 }
 0x177   : > { %v549_v49 = vadd.f32 3.0, %v541_v46 }
 0x178   : > { %v552_v53 = vmax.f32 %v550_v47, 0.0  ;;  %v1058_v54 = vpop.f32.mrb[2].mxu0 }
 0x179   : > { %v551_v55 = vmax.f32 %v549_v49, 0.0  ;;  %v634_v56 = vadd.f32 %v1058_v54, %v381_v35  ;;  %v628_v57 = vpop.f32.mrb[3].mxu0 }
 0x17a   : > { %v554_v58 = vmin.f32 %v552_v53, 6.0  ;;  %v629_v59 = vadd.f32 %v628_v57, %v376_v34  ;;  %v716_v53 = vld [vmem:[#allocation2] sm:$0xff] (!%p1025_p13) }
 0x17b   : > { %v553_v61 = vmin.f32 %v551_v55, 6.0  ;;  %v638_v62 = vadd.f32 3.0, %v634_v56 }
 0x17c   : > { %v556_v10 = vmul.f32 %v554_v58, %v546_v44  ;;  %v637_v13 = vadd.f32 3.0, %v629_v59 }
 0x17d   : > { %v555_v14 = vmul.f32 %v553_v61, %v541_v46  ;;  %v640_v15 = vmax.f32 %v638_v62, 0.0 }
 0x17e   : > { %v560_v16 = vsel %vm351_vm1, 0.0, %v556_v10  ;;  %v639_v17 = vmax.f32 %v637_v13, 0.0 }
 0x17f   : > { %v660_v19 = vmul.f32 %v657_v51, %v560_v16  ;;  %v559_v20 = vsel %vm351_vm1, 0.0, %v555_v14  ;;  %v642_v21 = vmin.f32 %v640_v15, 6.0 }
 0x180   : > { %v659_v22 = vmul.f32 %v652_v40, %v559_v20  ;;  %v641_v26 = vmin.f32 %v639_v17, 6.0 }
 0x181   : > { %v644_v27 = vmul.f32 %v642_v21, %v634_v56  ;;  %v672_v29 = vadd.f32 %v670_v18, %v660_v19  ;;  %v717_v56 = vld [vmem:[#allocation2 + $0x8] sm:$0xff] (!%p1025_p13) }
 0x182   : > { %v671_v30 = vadd.f32 %v669_v23, %v659_v22  ;;  %v643_v31 = vmul.f32 %v641_v26, %v629_v59 }
 0x183   : > { %v648_v32 = vsel %vm561_vm3, 0.0, %v644_v27 }
 0x184   : > { %v647_v33 = vsel %vm561_vm3, 0.0, %v643_v31  ;;  %v682_v34 = vmul.f32 %v679_v28, %v648_v32 }
 0x185   : > { %v681_v35 = vmul.f32 %v675_v63, %v647_v33 }
 0x186   : > { %v684_v37 = vadd.f32 %v682_v34, %v672_v29 }
 0x187   : > { %v683_v39 = vadd.f32 %v681_v35, %v671_v30 }
 0x188   : > { %v696_v41 = vadd.f32 %v693_v36, %v684_v37 }
 0x189   : > { %v695_v40 = vadd.f32 %v688_v38, %v683_v39 }
 0x18a   : > { %v698_v42 = vadd.f32 3.0, %v696_v41 }
 0x18b   : > { %v697_v43 = vadd.f32 3.0, %v695_v40  ;;  %708 = sbr.rel (%p1025_p13) target bundleno = 553 (0x229), region = 40 }
 0x18c   : > { %v700_v44 = vmax.f32 %v698_v42, 0.0 }
 0x18d   : > { %v699_v45 = vmax.f32 %v697_v43, 0.0 }
 0x18e   : > { %v702_v46 = vmin.f32 %v700_v44, 6.0 }
 0x18f   : > { %v701_v47 = vmin.f32 %v699_v45, 6.0 }
 0x190   : > { %v1474_v48 = vmul.f32 %v702_v46, %v696_v41 }
 0x191   : > { %v1476_v49 = vmul.f32 %v701_v47, %v695_v40 }
 0x192   : > { %v722_v51 = vsel %vm718_vm4, %v1474_v48, 0.0 }
 0x193   : > { %v721_v50 = vsel %vm718_vm4, %v1476_v49, 0.0 }
 0x194   : > { %723 = vadd.xlane.f32.xlu0 %v721_v50 }
 0x198   : > { %725 = vadd.xlane.f32.xlu0 %v722_v51 }
 0x221   : > { %v724_v54 = vpop.xlane.xlu0 %723 }
 0x222   : > { %v727_v55 = vadd.f32 %v724_v54, %v716_v53 }
 0x224   : > { %730 = vst.msk [vmem:[#allocation2] sm:$0xff] %vm713_vm5, %v727_v55 }
 0x225   : > { %v726_v57 = vpop.xlane.xlu0 %725 }
 0x226   : > { %v728_v58 = vadd.f32 %v726_v57, %v717_v56 }
 0x228   : > { %731 = vst.msk [vmem:[#allocation2 + $0x8] sm:$0xff] %vm713_vm5, %v728_v58 }
 0x229 PF: > { %p1026_p0 = scmp.ne.s32.totalorder %s1239_s18, 1 }
 0x22a   : > { %v1264_v60 = vmov (!%p1026_p0), 0   ;;  %v768_v21 = vshrl.u32 (!%p1026_p0), %v344_v24, 7  ;;  %vm789_vm6 = vcmask (!%p1026_p0), 7168   ;;  %vm1266_vm7 = vmmov (!%p1026_p0), 0  }
 0x22b   : > { %735 = sbr.rel (%p1026_p0) target bundleno = 1232 (0x4d0), region = 48  ;;  %v740_v25 = vld [vmem:[#allocation2] sm:$0xff] (!%p1026_p0)  ;;  %1159 = vset.pattern.permute.xlu0 (!%p1026_p0), %v1264_v60  ;;  %1160 = vset.pattern.permute.xlu1 (!%p1026_p0), %v1264_v60  ;;  %vm811_vm8 = vcmask (!%p1026_p0), 130048  }
 0x22c   : > { %v742_v61 = vmul.f32 (!%p1026_p0), 0.0625, %v740_v25  ;;  %v769_v26 = vsub.s32 (!%p1026_p0), 0, %v768_v21 }
 0x22e   : > { %746 = vperm.xlu0 (!%p1026_p0), %1159, %v742_v61  }
 0x22f   : > { %v741_v59 = vld [vmem:[#allocation2 + $0x8] sm:$0xff] (!%p1026_p0) }
 0x230   : > { %v743_v62 = vmul.f32 (!%p1026_p0), 0.0625, %v741_v59 }
 0x232   : > { %751 = vperm.xlu0 %1159, %v743_v62  }
 0x2ad   : > { %v747_v63 = vpop.permute.xlu0 %746 }
 0x2ae   : > { %v754_v3 = vmul.f32 %v747_v63, %v1368_v0 }
 0x2b0   : > { %v756_v13 = vsel %vm383_vm0, %v754_v3, 0.0 }
 0x2b1   : > { %v752_v10 = vpop.permute.xlu0 %751 }
 0x2b2   : > { %v755_v11 = vmul.f32 %v752_v10, %v1373_v1 }
 0x2b4   : > { %v757_v14 = vsel %vm383_vm0, %v755_v11, 0.0 }
 0x2b5   : > { %v758_v15 = vadd.f32 %v757_v14, %v756_v13 }
 0x2b7   : > { %v759_v16 = vrot.slane %v758_v15, 4 }
 0x2b9   : > { %v760_v17 = vadd.f32 %v759_v16, %v758_v15 }
 0x2bb   : > { %v761_v18 = vrot.slane %v760_v17, 2 }
 0x2bd   : > { %v762_v19 = vadd.f32 %v761_v18, %v760_v17 }
 0x2bf   : > { %v763_v20 = vrot.slane %v762_v19, 1 }
 0x2c1   : > { %v764_v22 = vadd.f32 %v763_v20, %v762_v19 }
 0x2c3   : > { %v765_v23 = vadd.f32 %v764_v22, %v1387_v4 }
 0x2c5   : > { %v766_v0 = vmax.f32 %v765_v23, 0.0 }
 0x2c7   : > { %v770_v27 = vrot.slane %v766_v0, %v769_v26 }
 0x2c9   : > { %v771_v1 = vmul.f32 %v770_v27, %v1378_v2  ;;  %v772_v29 = vmul.f32 %v770_v27, %v1392_v5 }
 0x2cb   : > { %v773_v28 = vsel %vm383_vm0, %v771_v1, 0.0  ;;  %v776_v30 = vsel %vm383_vm0, %v772_v29, 0.0 }
 0x2cc   : > { %774 = vadd.xlane.f32.xlu1 %v773_v28 }
 0x2d0   : > { %777 = vadd.xlane.f32.xlu1 %v776_v30 }
 0x359   : > { %v775_v31 = vpop.xlane.xlu1 %774 }
 0x35a   : > { %v779_v32 = vadd.f32 %v775_v31, %v1397_v6  ;;  %v1265_v6 = vmov 0.0|0.0  }
 0x35b   : > { %1066 = vmatprep.subr.bf16.mxu0 %v1265_v6 }
 0x35c   : > { %v781_v24 = vadd.f32 3.0, %v779_v32 }
 0x35d   : > { %v778_v33 = vpop.xlane.xlu1 %777 }
 0x35e   : > { %v783_v34 = vmax.f32 %v781_v24, 0.0  ;;  %v780_v4 = vadd.f32 %v778_v33, %v1402_v7  ;;  %v1267_v7 = vmov 0.0  }
 0x35f   : > { %1063 = vmatprep.mubr.msk.f32.mxu0 %vm1266_vm7, %v1267_v7 }
 0x360   : > { %v785_v35 = vmin.f32 %v783_v34, 6.0  ;;  %v782_v36 = vadd.f32 3.0, %v780_v4 }
 0x362   : > { %v787_v2 = vmul.f32 0.16666667, %v785_v35  ;;  %v784_v37 = vmax.f32 %v782_v36, 0.0 }
 0x364   : > { %790 = vst.msk [vmem:[#allocation3] sm:$0xff] %vm789_vm6, %v787_v2  ;;  %v786_v38 = vmin.f32 %v784_v37, 6.0 }
 0x366   : > { %v788_v5 = vmul.f32 0.16666667, %v786_v38 }
 0x368   : > { %791 = vst.msk [vmem:[#allocation3 + $0x8] sm:$0xff] %vm789_vm6, %v788_v5 }
 0x36b   : > { %v792_v39 = vld [vmem:[#allocation3] sm:$0xff] }
 0x36c   : > { %796 = vperm.xlu0 %1159, %v792_v39  }
 0x36f   : > { %v793_v41 = vld [vmem:[#allocation3 + $0x8] sm:$0xff] }
 0x370   : > { %808 = vperm.xlu0 %1159, %v1412_v9   ;;  %801 = vperm.xlu1 %1160, %v793_v41  }
 0x3eb   : > { %v797_v40 = vpop.permute.xlu0 %796 }
 0x3ec   : > { %v804_v43 = vmul.f32 %v797_v40, %v1476_v49 }
 0x3ef   : > { %v802_v42 = vpop.permute.xlu1 %801  ;;  %v809_v46 = vpop.permute.xlu0 %808 }
 0x3f0   : > { %v805_v44 = vmul.f32 %v802_v42, %v1474_v48 }
 0x3f2   : > { %v1067_v45 = vpack.c.bf16 %v805_v44, %v804_v43 }
 0x3f4   : > { %1068 = vmatpush3.bf16.msra.mxu0 %v1067_v45 }
 0x3f7   : > { %1064 = vmatmul.mubr.msk.f32.vlgmr.msra.gmra.mrb[0].mxu0 %vm811_vm8, %v1407_v8 }
 0x4ca   : > { %v881_v9 = vpop.f32.mrb[0].mxu0 }
 0x4cb   : > { %v882_v47 = vadd.f32 %v881_v9, %v809_v46  ;;  %v1065_v50 = vpop.f32.mrb[1].mxu0 }
 0x4cd   : > { %v885_v51 = vadd.f32 %v882_v47, %v1428_v12 }
 0x4cf   : > { %886 = vst [vmem:[%s291_s7] sm:$0xff] %v885_v51 }
 0x4d0 PF: > { %s1029_s18 = sshll.u32 %s1243_s19, 7  ;;  %s903_s9 = sshll.u32 %s291_s7, 4  ;;  %s904_s9 = int_to_ptr.vmem [resolvable:$true] %s903_s9 }
 0x4d1   : > { %s1507_s8 = scalar_lea.hbm %s1562_s4, %s1029_s18  ;;  %s1568_s10 = sand.u32 1, %s1231_s16  }
 0x4d2   : > { %s888_s11 = scalar_lea.sflag [#allocation5], %s1568_s10  ;;  %s1161_s26 = scalar_lea.vmem %s904_s9, 128 }
 0x4d3   : > { %p1162_p1 = scmp.ne.s32.totalorder %s904_s9, %s1161_s26  ;;  %s1268_s12 = smov [#allocation4]  }
 0x4d4   : > { %s1165_s14 = sshll.u32 %s1268_s12, 4  ;;  %s1166_s14 = int_to_ptr.vmem [resolvable:$false] %s1165_s14 }
 0x4d5   : > { %p1163_p2 = pnand %p1162_p1, %p1343_p3  ;;  %s1167_s24 = scalar_lea.vmem %s1166_s14, 256 }
 0x4d6   : > { %p1168_p5 = scmp.lt.s32.totalorder %s904_s9, %s1166_s14  ;;  %p1169_p6 = scmp.lt.s32.totalorder %s1167_s24, %s1161_s26 }
 0x4d7   : > { %p1164_p4 = pneg %p1163_p2 }
 0x4d8   : > { %p1170_p7 = por %p1169_p6, %p1168_p5 }
 0x4da   : > { %p1171_p8 = pnand %p1170_p7, %p1164_p4 }
 0x4dc   : > { %1174 = shalt.err (!%p1171_p8)
}
 0x4dd   : > { %s1175_s19 = scalar_lea.hbm %s1507_s8, 128  ;;  %s1179_s23 = scalar_lea.hbm %s1562_s4, 256 }
 0x4de   : > { %p1176_p10 = scmp.ne.s32.totalorder %s1507_s8, %s1175_s19  ;;  %p1180_p13 = scmp.lt.u32.totalorder %s1507_s8, %s1562_s4 }
 0x4df   : > { %p1181_p0 = scmp.lt.u32.totalorder %s1179_s23, %s1175_s19  ;;  %p1183_p2 = scmp.lt.u32.totalorder %s1175_s19, %s1507_s8 }
 0x4e0   : > { %p1177_p11 = pnand %p1176_p10, %p1343_p3 }
 0x4e1   : > { %p1182_p1 = por %p1181_p0, %p1180_p13 }
 0x4e2   : > { %p1178_p12 = pneg %p1177_p11 }
 0x4e3   : > { %p1184_p4 = por %p1183_p2, %p1182_p1 }
 0x4e5   : > { %p1185_p5 = pnand %p1184_p4, %p1178_p12 }
 0x4e7   : > { %1188 = shalt.err (!%p1185_p5)
}
 0x4e8   : > { %1069 = dma.vmem_to_hbm [thread:$0]  (%p1343_p3), %s904_s9, 128, %s1507_s8, %s888_s11  }
 0x4e9 PF: > { %p1075_p6 = scmp.ge.s32.totalorder %s1255_s22, 2  ;;  %s915_s6 = sand.u32 1, %s1227_s15  }
 0x4ea   : > { %s916_s30 = scalar_lea.sflag [#allocation5], %s915_s6 }
 0x4eb   : > { %p1072_p7 = pnand %p1075_p6, %p1353_p9 }
 0x4ed   : > { %1222 = dma.done.wait (!%p1072_p7), %s916_s30, 128  }
 0x4ee   : > { %1224 = vsyncadd (!%p1072_p7), %s916_s30, 4294967168  ;;  %s17_s22 = sadd.s32 1, %s1255_s22   ;;  %s1569_s27 = sld [smem:[#allocation7_spill]] }
 0x4ef   : > { %p14_p8 = scmp.ge.s32.totalorder %s17_s22, 6   ;;  %s1570_s15 = smov %s1231_s16 }
 0x4f0   : > { %s1571_s16 = smov %s1235_s17  ;;  %s1572_s17 = smov %s1361_s5 }
 0x4f1   : > { %s1573_s18 = smov %s1247_s20  ;;  %s1574_s19 = smov %s1251_s21 }
 0x4f2   : > { %s1575_s20 = smov %s1578_s25  ;;  %16 = sbr.rel (!%p14_p8) target bundleno = 5 (0x5), region = 93 }
 0x4f4   : > { %s1576_s21 = smov %s1569_s27 }
 0x4f9   :  { %921 = vsyncpa [#allocation5], 1 }
 0x4fa   :  { %923 = vsyncpa [#allocation5 + $0x1], 1 }

</bundles_post_ra>
